<compile_context>
chip_gen: v6e
topology: v6e:2x2x1
jax: 0.10.0
libtpu: 0.0.40
codegen_flags: <defaults>
</compile_context>

<pallas_src>
import functools

import jax
import jax.numpy as jnp
from jax.experimental import pallas as pl
from jax.experimental.pallas import tpu as pltpu

_VMEM_TILE_BUDGET = 24 * 1024 * 1024   # target for the double-buffered tile footprint
_VMEM_LIMIT_CAP = 48 * 1024 * 1024     # never request more scoped VMEM than this


# ----------------------------- Pallas kernels ------------------------------ #

def _conv_stats_kernel(*refs, num_feats, bn, hw, tm, mask_tail):
    """1x1 conv as (C_out,C_f)@(C_f,tm) MXU matmuls per batch element, plus
    per-channel sum / sum-of-squares partials (f32) for training-mode BN."""
    x_refs = refs[:num_feats]
    w_refs = refs[num_feats:2 * num_feats]
    y_ref, sum_ref, sqsum_ref = refs[2 * num_feats:]

    j = pl.program_id(1)
    c_out = sum_ref.shape[0]

    if mask_tail:
        lane = jax.lax.broadcasted_iota(jnp.int32, (1, tm), 1)
        valid = (j * tm + lane) < hw           # (1, tm); broadcasts over channels

    ch_sum = jnp.zeros((c_out, 1), jnp.float32)
    ch_sq = jnp.zeros((c_out, 1), jnp.float32)
    for bi in range(bn):                        # static (unrolled) batch block
        y = jnp.dot(w_refs[0][...], x_refs[0][bi],
                    preferred_element_type=jnp.float32)
        for f in range(1, num_feats):
            y = y + jnp.dot(w_refs[f][...], x_refs[f][bi],
                            preferred_element_type=jnp.float32)
        y_ref[bi] = y.astype(y_ref.dtype)       # OOB lanes of the last tile are masked

        if mask_tail:                           # padded lanes never enter the stats
            ys = jnp.where(valid, y, 0.0)
            ysq = jnp.where(valid, y * y, 0.0)
        else:
            ys, ysq = y, y * y
        # cross-lane reductions -> XLU (free slot next to the MXU work)
        ch_sum = ch_sum + jnp.sum(ys, axis=-1, keepdims=True)
        ch_sq = ch_sq + jnp.sum(ysq, axis=-1, keepdims=True)

    @pl.when(j == 0)
    def _():
        sum_ref[...] = jnp.zeros_like(sum_ref)
        sqsum_ref[...] = jnp.zeros_like(sqsum_ref)

    sum_ref[...] += ch_sum
    sqsum_ref[...] += ch_sq


def _bn_relu_kernel(y_ref, scale_ref, shift_ref, o_ref):
    """Pre-folded BatchNorm (per-channel scale/shift, f32) + ReLU, streaming."""
    y = y_ref[...].astype(jnp.float32)
    o_ref[...] = jnp.maximum(y * scale_ref[...] + shift_ref[...],
                             0.0).astype(o_ref.dtype)


# ----------------------------- tiling helpers ------------------------------ #

def _pick_lane_tile(hw, cap):
    """Lane tile: full extent if it fits, else the multiple of 128 <= cap that
    minimises dead lanes.  Returns (tile, has_ragged_tail)."""
    if hw <= cap:
        return hw, False                        # full-extent block is always legal
    best, best_waste = 128, None
    for cand in range(128, cap + 1, 128):
        waste = (-hw) % cand
        if best_waste is None or waste < best_waste or (
                waste == best_waste and cand > best):
            best, best_waste = cand, waste
    return best, (hw % best) != 0


def _pick_batch_block(n, tm, per_bn_bytes, fixed_bytes, target_lanes=2048):
    """Largest divisor of n fitting the VMEM tile budget (stop once a step
    already spans >= target_lanes lanes)."""
    bn = 1
    for cand in range(1, n + 1):
        if n % cand:
            continue
        if fixed_bytes + cand * per_bn_bytes > _VMEM_TILE_BUDGET:
            break
        bn = cand
        if cand * tm >= target_lanes:
            break
    return bn


def _vmem_limit(footprint_bytes):
    return int(min(_VMEM_LIMIT_CAP, max(16 * 1024 * 1024, 2 * footprint_bytes)))


# ------------------------------- wrapper ----------------------------------- #

def nddr_forward(features, conv_weight, bn_gamma, bn_beta, *, eps=1e-3, tm=1024):
    """features: list of NCHW arrays (same dtype). conv_weight: (C_out, C_in, 1, 1)."""
    n, _, h, w = features[0].shape
    dtype = features[0].dtype
    assert all(f.dtype == dtype for f in features)
    assert all(f.shape[0] == n and f.shape[2:] == (h, w) for f in features)
    c_feats = [int(f.shape[1]) for f in features]
    c_in = sum(c_feats)
    c_out = int(conv_weight.shape[0])
    assert conv_weight.shape[1] == c_in

    hw = h * w
    itemsize = jnp.dtype(dtype).itemsize

    # ---- tile selection from a per-core VMEM budget (v5e / v6e / v7x safe) ----
    col_bytes_p1 = 2 * (c_in + c_out) * itemsize            # x in + y out, dbl-buffered
    lane_cap1 = max(128, min(int(tm),
                             (_VMEM_TILE_BUDGET // col_bytes_p1) // 128 * 128))
    tm1, mask_tail = _pick_lane_tile(hw, lane_cap1)
    fixed_p1 = 2 * c_out * c_in * itemsize + 16 * c_out     # resident weights + stats
    per_bn_p1 = col_bytes_p1 * tm1
    bn1 = _pick_batch_block(n, tm1, per_bn_p1, fixed_p1)

    col_bytes_p2 = 4 * c_out * itemsize                     # y in + out, dbl-buffered
    lane_cap2 = max(128, min(max(int(tm), 2048),
                             (_VMEM_TILE_BUDGET // col_bytes_p2) // 128 * 128))
    tm2, _ = _pick_lane_tile(hw, lane_cap2)                 # pass 2 needs no stats mask
    per_bn_p2 = col_bytes_p2 * tm2
    bn2 = _pick_batch_block(n, tm2, per_bn_p2, 8 * c_out)

    # ---- inputs: NCHW consumed directly -> free reshape, no pad/convert pass ----
    xs = [f.reshape(n, c, hw) for f, c in zip(features, c_feats)]

    # split the 1x1-conv weight per upstream feature -> no concat of the inputs;
    # keep it in the model dtype so bf16 inputs take the native bf16 MXU path.
    w2d = conv_weight.reshape(c_out, c_in).astype(dtype)
    ws, off = [], 0
    for c_f in c_feats:
        ws.append(w2d[:, off:off + c_f])
        off += c_f

    nf = len(features)
    grid1 = (n // bn1, pl.cdiv(hw, tm1))
    x_specs = [pl.BlockSpec((bn1, c_f, tm1), lambda b, j: (b, 0, j))
               for c_f in c_feats]
    w_specs = [pl.BlockSpec((c_out, c_f), lambda b, j: (0, 0)) for c_f in c_feats]

    # Pass 1: conv + per-batch-block channel statistics.
    y, part_sum, part_sqsum = pl.pallas_call(
        functools.partial(_conv_stats_kernel, num_feats=nf, bn=bn1,
                          hw=hw, tm=tm1, mask_tail=mask_tail),
        out_shape=(
            jax.ShapeDtypeStruct((n, c_out, hw), dtype),
            jax.ShapeDtypeStruct((n // bn1, c_out, 1), jnp.float32),
            jax.ShapeDtypeStruct((n // bn1, c_out, 1), jnp.float32),
        ),
        grid_spec=pltpu.PrefetchScalarGridSpec(
            num_scalar_prefetch=0,
            grid=grid1,
            in_specs=x_specs + w_specs,
            out_specs=(
                pl.BlockSpec((bn1, c_out, tm1), lambda b, j: (b, 0, j)),
                pl.BlockSpec((None, c_out, 1), lambda b, j: (b, 0, 0)),
                pl.BlockSpec((None, c_out, 1), lambda b, j: (b, 0, 0)),
            ),
        ),
        compiler_params=pltpu.CompilerParams(
            dimension_semantics=("parallel", "arbitrary"),
            vmem_limit_bytes=_vmem_limit(fixed_p1 + bn1 * per_bn_p1)),
    )(*xs, *ws)

    # ---- fold training-mode BN (batch stats, biased variance) once (tiny XLA) ----
    # Sum RAW partial sums/sqsums over batch blocks, then divide by the true count.
    # TODO(synk): E[y^2]-mean^2 in f32 can cancel for extreme |mean|/std at production
    # sizes; switch to per-tile centered (Welford-style) partials if that bites.
    m_total = jnp.float32(n * hw)
    ch_sum = jnp.sum(part_sum, axis=0)                       # (c_out, 1)
    ch_sqsum = jnp.sum(part_sqsum, axis=0)
    mean = ch_sum / m_total
    var = jnp.maximum(ch_sqsum / m_total - mean * mean, 0.0)
    inv = jax.lax.rsqrt(var + eps)
    scale = bn_gamma.astype(jnp.float32).reshape(c_out, 1) * inv
    shift = bn_beta.astype(jnp.float32).reshape(c_out, 1) - mean * scale

    # Pass 2: streaming scale/shift + ReLU; output aliases the y buffer.
    grid2 = (n // bn2, pl.cdiv(hw, tm2))
    out = pl.pallas_call(
        _bn_relu_kernel,
        out_shape=jax.ShapeDtypeStruct((n, c_out, hw), dtype),
        grid_spec=pltpu.PrefetchScalarGridSpec(
            num_scalar_prefetch=0,
            grid=grid2,
            in_specs=[
                pl.BlockSpec((bn2, c_out, tm2), lambda b, j: (b, 0, j)),
                pl.BlockSpec((c_out, 1), lambda b, j: (0, 0)),
                pl.BlockSpec((c_out, 1), lambda b, j: (0, 0)),
            ],
            out_specs=pl.BlockSpec((bn2, c_out, tm2), lambda b, j: (b, 0, j)),
        ),
        compiler_params=pltpu.CompilerParams(
            dimension_semantics=("parallel", "parallel"),
            vmem_limit_bytes=_vmem_limit(8 * c_out + bn2 * per_bn_p2)),
        input_output_aliases={0: 0},
    )(y, scale, shift)

    return out.reshape(n, c_out, h, w)


# --------------------------- deterministic params --------------------------- #

def make_nddr_conv_weight(in_channels, out_channels, init_weights=(0.9, 0.1)):
    """Mirror the PyTorch __init__: block-diagonal identity init, (C_out, C_in, 1, 1)."""
    assert in_channels >= out_channels and in_channels % out_channels == 0
    mult = in_channels // out_channels - 1
    blocks = [jnp.eye(out_channels, dtype=jnp.float32) * init_weights[0]]
    blocks += [jnp.eye(out_channels, dtype=jnp.float32) * init_weights[1] / float(mult)
               for _ in range(mult)]
    w = jnp.concatenate(blocks, axis=1)                      # (C_out, C_in)
    return w.reshape(out_channels, in_channels, 1, 1)


# ------------------------------- reference ---------------------------------- #

def nddr_forward_ref(features, conv_weight, gamma, beta, eps=1e-3):
    x = jnp.concatenate(features, axis=1)                    # (N, C_in, H, W)
    c_out, c_in = conv_weight.shape[:2]
    w2d = conv_weight.reshape(c_out, c_in)
    y = jnp.einsum('nchw,oc->nohw', x, w2d)                  # 1x1 conv, no bias
    mean = jnp.mean(y, axis=(0, 2, 3), keepdims=True)
    var = jnp.mean((y - mean) ** 2, axis=(0, 2, 3), keepdims=True)  # biased (train)
    y = (y - mean) / jnp.sqrt(var + eps)
    y = y * gamma.reshape(1, c_out, 1, 1) + beta.reshape(1, c_out, 1, 1)
    return jnp.maximum(y, 0.0)


# --------------------------------- main ------------------------------------- #

if __name__ == "__main__":
    key = jax.random.PRNGKey(0)
    k1, k2 = jax.random.split(key)

    N, C_per_feat, H, W = 2, 8, 16, 16       # two upstream feature maps
    out_channels = 8
    in_channels = 2 * C_per_feat             # 16, in_channels % out_channels == 0

    feat_a = jax.random.normal(k1, (N, C_per_feat, H, W), dtype=jnp.float32)
    feat_b = jax.random.normal(k2, (N, C_per_feat, H, W), dtype=jnp.float32)
    features = [feat_a, feat_b]

    conv_weight = make_nddr_conv_weight(in_channels, out_channels,
                                        init_weights=(0.9, 0.1))
    bn_gamma = jnp.ones((out_channels,), jnp.float32)    # nn.init.constant_(bn.weight, 1)
    bn_beta = jnp.zeros((out_channels,), jnp.float32)    # nn.init.constant_(bn.bias, 0)

    fwd = jax.jit(functools.partial(nddr_forward, eps=1e-3, tm=1024))
    out = fwd(features, conv_weight, bn_gamma, bn_beta)
    out = jax.block_until_ready(out)

    ref = nddr_forward_ref(features, conv_weight, bn_gamma, bn_beta, eps=1e-3)
    assert out.shape == (N, out_channels, H, W)
    assert jnp.allclose(out, ref, atol=1e-4, rtol=1e-4), "mismatch vs reference"

    print("KERNEL_OK")
</pallas_src>

<mosaic_0001>
module attributes {stable_mosaic.version = 11 : i64} {
  func.func @_conv_stats_kernel(%arg0: i32, %arg1: i32, %arg2: memref<2x8x256xf32, #tpu.memory_space<vmem>>, %arg3: memref<2x8x256xf32, #tpu.memory_space<vmem>>, %arg4: memref<8x8xf32, #tpu.memory_space<vmem>>, %arg5: memref<8x8xf32, #tpu.memory_space<vmem>>, %arg6: memref<2x8x256xf32, #tpu.memory_space<vmem>>, %arg7: memref<1x8x1xf32, #tpu.memory_space<vmem>>, %arg8: memref<1x8x1xf32, #tpu.memory_space<vmem>>) attributes {dimension_semantics = [#tpu.dimension_semantics<parallel>, #tpu.dimension_semantics<arbitrary>], iteration_bounds = array<i64: 1, 1>, scalar_prefetch = 0 : i64, scratch_operands = 0 : i64, tpu.core_type = #tpu.core_type<tc>, window_params = [{transform_indices = @transform_0, window_bounds = array<i64: 2, 8, 256>}, {transform_indices = @transform_1, window_bounds = array<i64: 2, 8, 256>}, {pipeline_mode = #tpu.pipeline_mode<synchronous>, transform_indices = @transform_2, window_bounds = array<i64: 8, 8>}, {pipeline_mode = #tpu.pipeline_mode<synchronous>, transform_indices = @transform_3, window_bounds = array<i64: 8, 8>}, {transform_indices = @transform_4, window_bounds = array<i64: 2, 8, 256>}, {transform_indices = @transform_5, window_bounds = array<i64: 1, 8, 1>}, {transform_indices = @transform_6, window_bounds = array<i64: 1, 8, 1>}]} {
    %cst = arith.constant 0.000000e+00 : f32
    %0 = vector.broadcast %cst : f32 to vector<8x1xf32>
    %cst_0 = arith.constant 0.000000e+00 : f32
    %1 = vector.broadcast %cst_0 : f32 to vector<8x1xf32>
    %c0 = arith.constant 0 : index
    %c0_1 = arith.constant 0 : index
    %2 = vector.load %arg4[%c0, %c0_1] : memref<8x8xf32, #tpu.memory_space<vmem>>, vector<8x8xf32>
    %c0_2 = arith.constant 0 : index
    %c0_3 = arith.constant 0 : index
    %c0_4 = arith.constant 0 : index
    %3 = vector.load %arg2[%c0_2, %c0_3, %c0_4] : memref<2x8x256xf32, #tpu.memory_space<vmem>>, vector<1x8x256xf32>
    %4 = vector.shape_cast %3 : vector<1x8x256xf32> to vector<8x256xf32>
    %cst_5 = arith.constant dense<0.000000e+00> : vector<8x256xf32>
    %5 = tpu.matmul %2, %4, %cst_5 {dimension_numbers = #tpu.dot_dimension_numbers<[1], [0], [0], [1], [0, 0, 1, 1], [], []>} : vector<8x8xf32>, vector<8x256xf32>, vector<8x256xf32> -> vector<8x256xf32>
    %c0_6 = arith.constant 0 : index
    %c0_7 = arith.constant 0 : index
    %6 = vector.load %arg5[%c0_6, %c0_7] : memref<8x8xf32, #tpu.memory_space<vmem>>, vector<8x8xf32>
    %c0_8 = arith.constant 0 : index
    %c0_9 = arith.constant 0 : index
    %c0_10 = arith.constant 0 : index
    %7 = vector.load %arg3[%c0_8, %c0_9, %c0_10] : memref<2x8x256xf32, #tpu.memory_space<vmem>>, vector<1x8x256xf32>
    %8 = vector.shape_cast %7 : vector<1x8x256xf32> to vector<8x256xf32>
    %cst_11 = arith.constant dense<0.000000e+00> : vector<8x256xf32>
    %9 = tpu.matmul %6, %8, %cst_11 {dimension_numbers = #tpu.dot_dimension_numbers<[1], [0], [0], [1], [0, 0, 1, 1], [], []>} : vector<8x8xf32>, vector<8x256xf32>, vector<8x256xf32> -> vector<8x256xf32>
    %10 = arith.addf %5, %9 : vector<8x256xf32>
    %c0_12 = arith.constant 0 : index
    %c0_13 = arith.constant 0 : index
    %c0_14 = arith.constant 0 : index
    %11 = vector.load %arg6[%c0_12, %c0_13, %c0_14] : memref<2x8x256xf32, #tpu.memory_space<vmem>>, vector<1x8x256xf32>
    %12 = vector.shape_cast %11 : vector<1x8x256xf32> to vector<8x256xf32>
    %13 = vector.shape_cast %10 : vector<8x256xf32> to vector<1x8x256xf32>
    tpu.vector_store %arg6[%c0_12, %c0_13, %c0_14], %13 {strides = array<i32>} : memref<2x8x256xf32, #tpu.memory_space<vmem>>, vector<1x8x256xf32>,
    %14 = arith.mulf %10, %10 : vector<8x256xf32>
    %cst_15 = arith.constant dense<0.000000e+00> : vector<8xf32>
    %15 = vector.multi_reduction <add>, %10, %cst_15 [1] : vector<8x256xf32> to vector<8xf32>
    %16 = vector.shape_cast %15 : vector<8xf32> to vector<8x1xf32>
    %17 = arith.addf %0, %16 : vector<8x1xf32>
    %cst_16 = arith.constant dense<0.000000e+00> : vector<8xf32>
    %18 = vector.multi_reduction <add>, %14, %cst_16 [1] : vector<8x256xf32> to vector<8xf32>
    %19 = vector.shape_cast %18 : vector<8xf32> to vector<8x1xf32>
    %20 = arith.addf %1, %19 : vector<8x1xf32>
    %c0_17 = arith.constant 0 : index
    %c0_18 = arith.constant 0 : index
    %21 = vector.load %arg4[%c0_17, %c0_18] : memref<8x8xf32, #tpu.memory_space<vmem>>, vector<8x8xf32>
    %c1 = arith.constant 1 : index
    %c0_19 = arith.constant 0 : index
    %c0_20 = arith.constant 0 : index
    %22 = vector.load %arg2[%c1, %c0_19, %c0_20] : memref<2x8x256xf32, #tpu.memory_space<vmem>>, vector<1x8x256xf32>
    %23 = vector.shape_cast %22 : vector<1x8x256xf32> to vector<8x256xf32>
    %cst_21 = arith.constant dense<0.000000e+00> : vector<8x256xf32>
    %24 = tpu.matmul %21, %23, %cst_21 {dimension_numbers = #tpu.dot_dimension_numbers<[1], [0], [0], [1], [0, 0, 1, 1], [], []>} : vector<8x8xf32>, vector<8x256xf32>, vector<8x256xf32> -> vector<8x256xf32>
    %c0_22 = arith.constant 0 : index
    %c0_23 = arith.constant 0 : index
    %25 = vector.load %arg5[%c0_22, %c0_23] : memref<8x8xf32, #tpu.memory_space<vmem>>, vector<8x8xf32>
    %c1_24 = arith.constant 1 : index
    %c0_25 = arith.constant 0 : index
    %c0_26 = arith.constant 0 : index
    %26 = vector.load %arg3[%c1_24, %c0_25, %c0_26] : memref<2x8x256xf32, #tpu.memory_space<vmem>>, vector<1x8x256xf32>
    %27 = vector.shape_cast %26 : vector<1x8x256xf32> to vector<8x256xf32>
    %cst_27 = arith.constant dense<0.000000e+00> : vector<8x256xf32>
    %28 = tpu.matmul %25, %27, %cst_27 {dimension_numbers = #tpu.dot_dimension_numbers<[1], [0], [0], [1], [0, 0, 1, 1], [], []>} : vector<8x8xf32>, vector<8x256xf32>, vector<8x256xf32> -> vector<8x256xf32>
    %29 = arith.addf %24, %28 : vector<8x256xf32>
    %c1_28 = arith.constant 1 : index
    %c0_29 = arith.constant 0 : index
    %c0_30 = arith.constant 0 : index
    %30 = vector.load %arg6[%c1_28, %c0_29, %c0_30] : memref<2x8x256xf32, #tpu.memory_space<vmem>>, vector<1x8x256xf32>
    %31 = vector.shape_cast %30 : vector<1x8x256xf32> to vector<8x256xf32>
    %32 = vector.shape_cast %29 : vector<8x256xf32> to vector<1x8x256xf32>
    tpu.vector_store %arg6[%c1_28, %c0_29, %c0_30], %32 {strides = array<i32>} : memref<2x8x256xf32, #tpu.memory_space<vmem>>, vector<1x8x256xf32>,
    %33 = arith.mulf %29, %29 : vector<8x256xf32>
    %cst_31 = arith.constant dense<0.000000e+00> : vector<8xf32>
    %34 = vector.multi_reduction <add>, %29, %cst_31 [1] : vector<8x256xf32> to vector<8xf32>
    %35 = vector.shape_cast %34 : vector<8xf32> to vector<8x1xf32>
    %36 = arith.addf %17, %35 : vector<8x1xf32>
    %cst_32 = arith.constant dense<0.000000e+00> : vector<8xf32>
    %37 = vector.multi_reduction <add>, %33, %cst_32 [1] : vector<8x256xf32> to vector<8xf32>
    %38 = vector.shape_cast %37 : vector<8xf32> to vector<8x1xf32>
    %39 = arith.addf %20, %38 : vector<8x1xf32>
    %c0_i32 = arith.constant 0 : i32
    %40 = arith.cmpi eq, %arg1, %c0_i32 : i32
    %41 = arith.extui %40 : i1 to i32
    %c0_i32_33 = arith.constant 0 : i32
    %42 = arith.cmpi ne, %41, %c0_i32_33 : i32
    scf.if %42 {
      %cst_46 = arith.constant 0.000000e+00 : f32
      %55 = vector.broadcast %cst_46 : f32 to vector<8x1xf32>
      %c0_47 = arith.constant 0 : index
      %c0_48 = arith.constant 0 : index
      %c0_49 = arith.constant 0 : index
      %56 = vector.load %arg7[%c0_47, %c0_48, %c0_49] : memref<1x8x1xf32, #tpu.memory_space<vmem>>, vector<1x8x1xf32>
      %57 = vector.shape_cast %56 : vector<1x8x1xf32> to vector<8x1xf32>
      %58 = vector.shape_cast %55 : vector<8x1xf32> to vector<1x8x1xf32>
      tpu.vector_store %arg7[%c0_47, %c0_48, %c0_49], %58 {strides = array<i32>} : memref<1x8x1xf32, #tpu.memory_space<vmem>>, vector<1x8x1xf32>,
      %cst_50 = arith.constant 0.000000e+00 : f32
      %59 = vector.broadcast %cst_50 : f32 to vector<8x1xf32>
      %c0_51 = arith.constant 0 : index
      %c0_52 = arith.constant 0 : index
      %c0_53 = arith.constant 0 : index
      %60 = vector.load %arg8[%c0_51, %c0_52, %c0_53] : memref<1x8x1xf32, #tpu.memory_space<vmem>>, vector<1x8x1xf32>
      %61 = vector.shape_cast %60 : vector<1x8x1xf32> to vector<8x1xf32>
      %62 = vector.shape_cast %59 : vector<8x1xf32> to vector<1x8x1xf32>
      tpu.vector_store %arg8[%c0_51, %c0_52, %c0_53], %62 {strides = array<i32>} : memref<1x8x1xf32, #tpu.memory_space<vmem>>, vector<1x8x1xf32>,
    } else {
    }
    %c0_34 = arith.constant 0 : index
    %c0_35 = arith.constant 0 : index
    %c0_36 = arith.constant 0 : index
    %43 = vector.load %arg7[%c0_34, %c0_35, %c0_36] : memref<1x8x1xf32, #tpu.memory_space<vmem>>, vector<1x8x1xf32>
    %44 = vector.shape_cast %43 : vector<1x8x1xf32> to vector<8x1xf32>
    %45 = arith.addf %44, %36 : vector<8x1xf32>
    %c0_37 = arith.constant 0 : index
    %c0_38 = arith.constant 0 : index
    %c0_39 = arith.constant 0 : index
    %46 = vector.load %arg7[%c0_37, %c0_38, %c0_39] : memref<1x8x1xf32, #tpu.memory_space<vmem>>, vector<1x8x1xf32>
    %47 = vector.shape_cast %46 : vector<1x8x1xf32> to vector<8x1xf32>
    %48 = vector.shape_cast %45 : vector<8x1xf32> to vector<1x8x1xf32>
    tpu.vector_store %arg7[%c0_37, %c0_38, %c0_39], %48 {strides = array<i32>} : memref<1x8x1xf32, #tpu.memory_space<vmem>>, vector<1x8x1xf32>,
    %c0_40 = arith.constant 0 : index
    %c0_41 = arith.constant 0 : index
    %c0_42 = arith.constant 0 : index
    %49 = vector.load %arg8[%c0_40, %c0_41, %c0_42] : memref<1x8x1xf32, #tpu.memory_space<vmem>>, vector<1x8x1xf32>
    %50 = vector.shape_cast %49 : vector<1x8x1xf32> to vector<8x1xf32>
    %51 = arith.addf %50, %39 : vector<8x1xf32>
    %c0_43 = arith.constant 0 : index
    %c0_44 = arith.constant 0 : index
    %c0_45 = arith.constant 0 : index
    %52 = vector.load %arg8[%c0_43, %c0_44, %c0_45] : memref<1x8x1xf32, #tpu.memory_space<vmem>>, vector<1x8x1xf32>
    %53 = vector.shape_cast %52 : vector<1x8x1xf32> to vector<8x1xf32>
    %54 = vector.shape_cast %51 : vector<8x1xf32> to vector<1x8x1xf32>
    tpu.vector_store %arg8[%c0_43, %c0_44, %c0_45], %54 {strides = array<i32>} : memref<1x8x1xf32, #tpu.memory_space<vmem>>, vector<1x8x1xf32>,
    return
  }
  func.func @transform_0(%arg0: i32, %arg1: i32) -> (i32, i32, i32) {
    %c0_i32 = arith.constant 0 : i32
    %c0_i32_0 = arith.constant 0 : i32
    return %arg0, %c0_i32, %arg1 : i32, i32, i32
  }
  func.func @transform_1(%arg0: i32, %arg1: i32) -> (i32, i32, i32) {
    %c0_i32 = arith.constant 0 : i32
    %c0_i32_0 = arith.constant 0 : i32
    return %arg0, %c0_i32, %arg1 : i32, i32, i32
  }
  func.func @transform_2(%arg0: i32, %arg1: i32) -> (i32, i32) {
    %c0_i32 = arith.constant 0 : i32
    %c0_i32_0 = arith.constant 0 : i32
    %c0_i32_1 = arith.constant 0 : i32
    return %c0_i32, %c0_i32_0 : i32, i32
  }
  func.func @transform_3(%arg0: i32, %arg1: i32) -> (i32, i32) {
    %c0_i32 = arith.constant 0 : i32
    %c0_i32_0 = arith.constant 0 : i32
    %c0_i32_1 = arith.constant 0 : i32
    return %c0_i32, %c0_i32_0 : i32, i32
  }
  func.func @transform_4(%arg0: i32, %arg1: i32) -> (i32, i32, i32) {
    %c0_i32 = arith.constant 0 : i32
    %c0_i32_0 = arith.constant 0 : i32
    return %arg0, %c0_i32, %arg1 : i32, i32, i32
  }
  func.func @transform_5(%arg0: i32, %arg1: i32) -> (i32, i32, i32) {
    %c0_i32 = arith.constant 0 : i32
    %c0_i32_0 = arith.constant 0 : i32
    %c0_i32_1 = arith.constant 0 : i32
    return %arg0, %c0_i32, %c0_i32_0 : i32, i32, i32
  }
  func.func @transform_6(%arg0: i32, %arg1: i32) -> (i32, i32, i32) {
    %c0_i32 = arith.constant 0 : i32
    %c0_i32_0 = arith.constant 0 : i32
    %c0_i32_1 = arith.constant 0 : i32
    return %arg0, %c0_i32, %c0_i32_0 : i32, i32, i32
  }
}

module attributes {stable_mosaic.version = 11 : i64} {
  func.func @_bn_relu_kernel(%arg0: i32, %arg1: i32, %arg2: memref<2x8x256xf32, #tpu.memory_space<vmem>>, %arg3: memref<8x1xf32, #tpu.memory_space<vmem>>, %arg4: memref<8x1xf32, #tpu.memory_space<vmem>>, %arg5: memref<2x8x256xf32, #tpu.memory_space<vmem>>) attributes {dimension_semantics = [#tpu.dimension_semantics<parallel>, #tpu.dimension_semantics<parallel>], iteration_bounds = array<i64: 1, 1>, scalar_prefetch = 0 : i64, scratch_operands = 0 : i64, tpu.core_type = #tpu.core_type<tc>, window_params = [{transform_indices = @transform_0, window_bounds = array<i64: 2, 8, 256>}, {pipeline_mode = #tpu.pipeline_mode<synchronous>, transform_indices = @transform_1, window_bounds = array<i64: 8, 1>}, {pipeline_mode = #tpu.pipeline_mode<synchronous>, transform_indices = @transform_2, window_bounds = array<i64: 8, 1>}, {transform_indices = @transform_3, window_bounds = array<i64: 2, 8, 256>}]} {
    %c0 = arith.constant 0 : index
    %c0_0 = arith.constant 0 : index
    %c0_1 = arith.constant 0 : index
    %0 = vector.load %arg2[%c0, %c0_0, %c0_1] : memref<2x8x256xf32, #tpu.memory_space<vmem>>, vector<2x8x256xf32>
    %c0_2 = arith.constant 0 : index
    %c0_3 = arith.constant 0 : index
    %1 = vector.load %arg3[%c0_2, %c0_3] : memref<8x1xf32, #tpu.memory_space<vmem>>, vector<8x1xf32>
    %2 = vector.shape_cast %1 : vector<8x1xf32> to vector<1x8x1xf32>
    %3 = vector.broadcast %2 : vector<1x8x1xf32> to vector<2x8x256xf32>
    %4 = arith.mulf %0, %3 : vector<2x8x256xf32>
    %c0_4 = arith.constant 0 : index
    %c0_5 = arith.constant 0 : index
    %5 = vector.load %arg4[%c0_4, %c0_5] : memref<8x1xf32, #tpu.memory_space<vmem>>, vector<8x1xf32>
    %6 = vector.shape_cast %5 : vector<8x1xf32> to vector<1x8x1xf32>
    %7 = vector.broadcast %6 : vector<1x8x1xf32> to vector<2x8x256xf32>
    %8 = arith.addf %4, %7 : vector<2x8x256xf32>
    %cst = arith.constant 0.000000e+00 : f32
    %9 = vector.broadcast %cst : f32 to vector<2x8x256xf32>
    %10 = arith.maximumf %8, %9 : vector<2x8x256xf32>
    %c0_6 = arith.constant 0 : index
    %c0_7 = arith.constant 0 : index
    %c0_8 = arith.constant 0 : index
    %11 = vector.load %arg5[%c0_6, %c0_7, %c0_8] : memref<2x8x256xf32, #tpu.memory_space<vmem>>, vector<2x8x256xf32>
    tpu.vector_store %arg5[%c0_6, %c0_7, %c0_8], %10 {strides = array<i32>} : memref<2x8x256xf32, #tpu.memory_space<vmem>>, vector<2x8x256xf32>,
    return
  }
  func.func @transform_0(%arg0: i32, %arg1: i32) -> (i32, i32, i32) {
    %c0_i32 = arith.constant 0 : i32
    %c0_i32_0 = arith.constant 0 : i32
    return %arg0, %c0_i32, %arg1 : i32, i32, i32
  }
  func.func @transform_1(%arg0: i32, %arg1: i32) -> (i32, i32) {
    %c0_i32 = arith.constant 0 : i32
    %c0_i32_0 = arith.constant 0 : i32
    %c0_i32_1 = arith.constant 0 : i32
    return %c0_i32, %c0_i32_0 : i32, i32
  }
  func.func @transform_2(%arg0: i32, %arg1: i32) -> (i32, i32) {
    %c0_i32 = arith.constant 0 : i32
    %c0_i32_0 = arith.constant 0 : i32
    %c0_i32_1 = arith.constant 0 : i32
    return %c0_i32, %c0_i32_0 : i32, i32
  }
  func.func @transform_3(%arg0: i32, %arg1: i32) -> (i32, i32, i32) {
    %c0_i32 = arith.constant 0 : i32
    %c0_i32_0 = arith.constant 0 : i32
    return %arg0, %c0_i32, %arg1 : i32, i32, i32
  }
}

</mosaic_0001>

<bundles_post_ra>
// kernel: nddr_forward.3
= control target key start
LH: loop header
LB: loop body
LE: loop exit
PB: predicated region body
PF: predicated region fallthrough
CT: control target
= control target key end

     0   :  { %v52_v0 = vmov 0   ;;  %s103_s1 = inlined_call_operand.vmem [shape: f32[8,1], index: 1, kind: input, shape index: {}]   ;;  %s104_s2 = inlined_call_operand.vmem [shape: f32[8,1], index: 2, kind: input, shape index: {}]   ;;  %s105_s0 = inlined_call_operand.vmem [shape: f32[2,8,256], index: 0, kind: input, shape index: {}, may-alias: {0,3}]   ;;  %s106_s3 = inlined_call_operand.vmem [shape: f32[2,8,256], index: 3, kind: output, shape index: {}, may-alias: {0,3}]  }
   0x1   :  { %51 = vset.pattern.permute.xlu0 %v52_v0  ;;  %v18_v1 = vld [vmem:[%s103_s1] sm:$0xff]  ;;  %v15_v5 = vld [vmem:[%s105_s0 + $0x8] sm:$0xff]  ;;  %v16_v6 = vld [vmem:[%s105_s0 + $0x10] sm:$0xff] }
   0x2   :  { %21 = vperm.xlu0 %51, %v18_v1   ;;  %v28_v2 = vld [vmem:[%s104_s2] sm:$0xff]  ;;  %v17_v7 = vld [vmem:[%s105_s0 + $0x18] sm:$0xff] }
   0x3   :  { %v14_v3 = vld [vmem:[%s105_s0] sm:$0xff] }
   0x6   :  { %31 = vperm.xlu0 %51, %v28_v2  }
  0x7d   :  { %v22_v4 = vpop.permute.xlu0 %21 }
  0x7e   :  { %v24_v8 = vmul.f32 %v22_v4, %v14_v3  ;;  %v25_v9 = vmul.f32 %v22_v4, %v15_v5  ;;  %v26_v10 = vmul.f32 %v22_v4, %v16_v6  ;;  %v27_v11 = vmul.f32 %v22_v4, %v17_v7 }
  0x81   :  { %v32_v12 = vpop.permute.xlu0 %31 }
  0x82   :  { %v34_v13 = vadd.f32 %v32_v12, %v24_v8  ;;  %v35_v14 = vadd.f32 %v32_v12, %v25_v9  ;;  %v36_v15 = vadd.f32 %v32_v12, %v26_v10  ;;  %v37_v16 = vadd.f32 %v32_v12, %v27_v11 }
  0x84   :  { %v38_v17 = vmax.f32 %v34_v13, 0.0  ;;  %v39_v18 = vmax.f32 %v35_v14, 0.0  ;;  %v40_v19 = vmax.f32 %v36_v15, 0.0  ;;  %v41_v20 = vmax.f32 %v37_v16, 0.0 }
  0x86   :  { %42 = vst [vmem:[%s106_s3] sm:$0xff] %v38_v17  ;;  %43 = vst [vmem:[%s106_s3 + $0x8] sm:$0xff] %v39_v18 }
  0x87   :  { %44 = vst [vmem:[%s106_s3 + $0x10] sm:$0xff] %v40_v19  ;;  %45 = vst [vmem:[%s106_s3 + $0x18] sm:$0xff] %v41_v20 }

// kernel: nddr_forward.2
= control target key start
LH: loop header
LB: loop body
LE: loop exit
PB: predicated region body
PF: predicated region fallthrough
CT: control target
= control target key end

     0   :  { %v393_v3 = vmov 0.0   ;;  %vm26_vm0 = vcmask 64512   ;;  %vm360_vm1 = vcmask 7168   ;;  %s497_s1 = inlined_call_operand.vmem [shape: f32[2,8,256], index: 1, kind: input, shape index: {}]   ;;  %s498_s0 = inlined_call_operand.vmem [shape: f32[2,8,256], index: 0, kind: input, shape index: {}]   ;;  %s499_s3 = inlined_call_operand.vmem [shape: f32[8,8], index: 3, kind: input, shape index: {}]   ;;  %s500_s2 = inlined_call_operand.vmem [shape: f32[8,8], index: 2, kind: input, shape index: {}]   ;;  %s501_s4 = inlined_call_operand.vmem [shape: f32[2,8,256], index: 4, kind: output, shape index: {0}]   ;;  %s502_s5 = inlined_call_operand.vmem [shape: f32[1,8,1], index: 5, kind: output, shape index: {1}]   ;;  %s503_s6 = inlined_call_operand.vmem [shape: f32[1,8,1], index: 6, kind: output, shape index: {2}]  }
   0x1   :  { %v25_v0 = vld [vmem:[%s497_s1 + $0x8] sm:$0xff]  ;;  %v24_v2 = vld [vmem:[%s497_s1] sm:$0xff]  ;;  %94 = vmatprep.mubr.f32.mxu0 %v393_v3  ;;  %168 = vmatprep.mubr.f32.mxu1 %v393_v3  ;;  %v387_v7 = vld [vmem:[%s497_s1 + $0x18] sm:$0xff]  ;;  %361 = vst.msk [vmem:[%s502_s5] sm:$0xff] %vm360_vm1, %v393_v3 }
   0x2   :  { %v22_v1 = vld [vmem:[%s498_s0 + $0x8] sm:$0xff]  ;;  %60 = vmatprep.subr.mxu0 %v25_v0  ;;  %v21_v4 = vld [vmem:[%s498_s0] sm:$0xff]  ;;  %v385_v8 = vld [vmem:[%s498_s0 + $0x18] sm:$0xff]  ;;  %362 = vst.msk [vmem:[%s503_s6] sm:$0xff] %vm360_vm1, %v393_v3 }
   0x3   :  { %134 = vmatprep.subr.mxu1 %v22_v1  ;;  %v23_v5 = vld [vmem:[%s499_s3] sm:$0xff]  ;;  %61 = vmatpush1.msra.mxu0 %v24_v2  ;;  %v386_v9 = vld [vmem:[%s497_s1 + $0x10] sm:$0xff] }
   0x4   :  { %v20_v6 = vld [vmem:[%s500_s2] sm:$0xff]  ;;  %135 = vmatpush1.msra.mxu1 %v21_v4  ;;  %382 = vmatmul.mubr.msk.f32.vlgmr.msra.gmra.mxu0 %vm26_vm0, %v23_v5  ;;  %v384_v10 = vld [vmem:[%s498_s0 + $0x10] sm:$0xff] }
   0x5   :  { %383 = vmatmul.mubr.msk.f32.vlgmr.msra.gmra.mxu1 %vm26_vm0, %v20_v6  ;;  %228 = vmatprep.subr.mxu0 %v387_v7 }
   0x6   :  { %302 = vmatprep.subr.mxu1 %v385_v8  ;;  %229 = vmatpush1.msra.mxu0 %v386_v9 }
   0x7   :  { %303 = vmatpush1.msra.mxu1 %v384_v10  ;;  %262 = vmatprep.mubr.f32.mxu0 %v393_v3 }
   0x8   :  { %336 = vmatprep.mubr.f32.mxu1 %v393_v3  ;;  %388 = vmatmul.mubr.msk.f32.vlgmr.msra.gmra.mxu0 %vm26_vm0, %v23_v5  ;;  %v363_v32 = vld [vmem:[%s502_s5] sm:$0xff] }
   0x9   :  { %389 = vmatmul.mubr.msk.f32.vlgmr.msra.gmra.mxu1 %vm26_vm0, %v20_v6  ;;  %v367_v37 = vld [vmem:[%s503_s6] sm:$0xff] }
  0xc4   :  { %v96_v11 = vpop.f32.mrf.mxu0 }
  0xc5   :  { %v170_v12 = vpop.f32.mrf.mxu1 }
  0xc6   :  { %v171_v13 = vadd.f32 %v170_v12, %v96_v11  ;;  %v98_v14 = vpop.f32.mrf.mxu0 }
  0xc7   :  { %v172_v15 = vpop.f32.mrf.mxu1 }
  0xc8   :  { %175 = vst [vmem:[%s501_s4] sm:$0xff] %v171_v13  ;;  %v173_v16 = vadd.f32 %v172_v15, %v98_v14  ;;  %v264_v17 = vpop.f32.mrf.mxu0  ;;  %v177_v25 = vmul.f32 %v171_v13, %v171_v13 }
  0xc9   :  { %v338_v18 = vpop.f32.mrf.mxu1 }
  0xca   :  { %176 = vst [vmem:[%s501_s4 + $0x8] sm:$0xff] %v173_v16  ;;  %v339_v19 = vadd.f32 %v338_v18, %v264_v17  ;;  %v179_v20 = vadd.f32 %v173_v16, %v171_v13  ;;  %v178_v21 = vmul.f32 %v173_v16, %v173_v16  ;;  %v266_v22 = vpop.f32.mrf.mxu0 }
  0xcb   :  { %v340_v23 = vpop.f32.mrf.mxu1 }
  0xcc   :  { %390 = vst [vmem:[%s501_s4 + $0x10] sm:$0xff] %v339_v19  ;;  %v341_v24 = vadd.f32 %v340_v23, %v266_v22  ;;  %180 = vadd.xlane.f32.xlu0 %v179_v20  ;;  %v183_v27 = vadd.f32 %v178_v21, %v177_v25  ;;  %v346_v29 = vmul.f32 %v339_v19, %v339_v19 }
  0xce   :  { %391 = vst [vmem:[%s501_s4 + $0x18] sm:$0xff] %v341_v24  ;;  %v348_v26 = vadd.f32 %v341_v24, %v339_v19  ;;  %v347_v28 = vmul.f32 %v341_v24, %v341_v24 }
  0xd0   :  { %349 = vadd.xlane.f32.xlu1 %v348_v26  ;;  %184 = vadd.xlane.f32.xlu0 %v183_v27  ;;  %v352_v30 = vadd.f32 %v347_v28, %v346_v29 }
  0xd4   :  { %353 = vadd.xlane.f32.xlu1 %v352_v30 }
 0x155   :  { %v181_v31 = vpop.xlane.xlu0 %180 }
 0x159   :  { %v350_v33 = vpop.xlane.xlu1 %349  ;;  %v185_v36 = vpop.xlane.xlu0 %184 }
 0x15a   :  { %v351_v34 = vadd.f32 %v350_v33, %v181_v31 }
 0x15c   :  { %v364_v35 = vadd.f32 %v363_v32, %v351_v34 }
 0x15d   :  { %v354_v38 = vpop.xlane.xlu1 %353 }
 0x15e   :  { %366 = vst.msk [vmem:[%s502_s5] sm:$0xff] %vm360_vm1, %v364_v35  ;;  %v355_v39 = vadd.f32 %v354_v38, %v185_v36 }
 0x160   :  { %v368_v40 = vadd.f32 %v367_v37, %v355_v39 }
 0x162   :  { %369 = vst.msk [vmem:[%s503_s6] sm:$0xff] %vm360_vm1, %v368_v40 }

</bundles_post_ra>
